<compile_context>
chip_gen: v5e
topology: v5e:2x2
jax: 0.10.0
libtpu: 0.0.40
codegen_flags: <defaults>
</compile_context>

<pallas_src>
import functools

import jax
import jax.numpy as jnp
from jax.experimental import pallas as pl
from jax.experimental.pallas import tpu as pltpu


def _cdiv(a, b):
    return (a + b - 1) // b


def _round_up(a, b):
    return _cdiv(a, b) * b


def _scored_pooling_kernel(b_ref, x_ref, w_ref, o_ref, acc_ref, *,
                           inv_n, valid_n, tile_n, steps_per_split,
                           needs_mask):
    # b_ref:   (1,)              SMEM  bias (f32)
    # x_ref:   (1, TILE_N, H)    VMEM  current x tile, native dtype
    # w_ref:   (1, H)            VMEM  linear weight row (resident)
    # o_ref:   (1, 1, H)         VMEM  f32 partial-output block (resident over N)
    # acc_ref: (1, H)            VMEM  f32 accumulator scratch
    n_idx = pl.program_id(2)

    @pl.when(n_idx == 0)
    def _():
        acc_ref[...] = jnp.zeros_like(acc_ref)

    x = x_ref[0]                                  # (TILE_N, H), native dtype
    if needs_mask:
        # Global step index over the (split, step) axes; zero rows beyond the
        # true N (covers both the ragged tail tile and padded split steps).
        t = pl.program_id(1) * steps_per_split + n_idx
        remaining = valid_n - t * tile_n
        row_ids = jax.lax.broadcasted_iota(jnp.int32, (tile_n, 1), 0)
        x = jnp.where(row_ids < remaining, x, jnp.zeros_like(x))

    w = w_ref[...]                                # (1, H)

    # Score logits on the MXU: contract over H (lane dim of both operands),
    # w_row . x^T -> (1, TILE_N), accumulated in f32.
    logits = jax.lax.dot_general(
        w, x, (((1,), (1,)), ((), ())),
        preferred_element_type=jnp.float32)
    score = jax.nn.sigmoid(logits + b_ref[0])     # (1, TILE_N) f32 (EUP)

    # Weighted-pooling partial on the MXU: (1, TILE_N) @ (TILE_N, H) -> (1, H).
    # score is cast to x.dtype (intentional; f32 accumulation below).
    partial = jax.lax.dot_general(
        score.astype(x.dtype), x, (((1,), (0,)), ((), ())),
        preferred_element_type=jnp.float32)
    acc_ref[...] += partial

    @pl.when(n_idx == pl.num_programs(2) - 1)
    def _():
        o_ref[0] = (acc_ref[...] * inv_n).astype(o_ref.dtype)


def scored_pooling(x, weight, bias, *, tile_n=None, n_split=None):
    """x: (B, T, S, H); weight: (H,); bias: (1,). Returns (B, H)."""
    B, T, S, H = x.shape
    N = T * S
    x2 = x.reshape(B, N, H)
    w_row = weight.reshape(1, H).astype(x.dtype)
    bias32 = bias.astype(jnp.float32)

    itemsize = x.dtype.itemsize
    pack = max(8, 32 // itemsize)                 # sublane pack: 8/16/32
    lane_h = _round_up(H, 128)                    # lane-padded H in VMEM
    row_bytes = lane_h * itemsize

    # Tile the reduction axis: ~8 MiB per x buffer (double-buffered by the
    # pipeline => ~16 MiB), computed from the PADDED row bytes.  No hard row
    # cap; clamp only to N itself.
    if tile_n is None:
        tile_n = max(pack, (8 << 20) // row_bytes)
    if tile_n >= N:
        tile_n = N                                # single step, full-dim block
    else:
        tile_n = max(pack, (tile_n // pack) * pack)

    n_steps = _cdiv(N, tile_n)

    # Split the N reduction across TensorCores when B alone can't keep both
    # v7x cores busy (harmless on 1-TC v5e/v6e).
    if n_split is None:
        n_split = 2 if (B == 1 and n_steps >= 2) else 1
    n_split = max(1, min(int(n_split), n_steps))
    steps_per_split = _cdiv(n_steps, n_split)

    needs_mask = (N % tile_n != 0) or (n_split * steps_per_split != n_steps)

    if n_split * steps_per_split == n_steps:
        x_index = lambda b, c, n: (b, c * steps_per_split + n, 0)
    else:
        last_blk = n_steps - 1                    # clamp padded split steps
        x_index = lambda b, c, n: (
            b, jnp.minimum(c * steps_per_split + n, last_blk), 0)

    # VMEM budget: 2 x-tile buffers + small (w, out, acc); cap at 48 MiB so it
    # is safe on v7x (64 MiB physical) while using v5e/v6e headroom.
    x_tile_bytes = _round_up(tile_n, pack) * row_bytes
    vmem_limit = int(min(48 << 20, max(32 << 20, 2 * x_tile_bytes + (4 << 20))))

    kernel = functools.partial(
        _scored_pooling_kernel, inv_n=1.0 / N, valid_n=N, tile_n=tile_n,
        steps_per_split=steps_per_split, needs_mask=needs_mask)

    partials = pl.pallas_call(
        kernel,
        out_shape=jax.ShapeDtypeStruct((B, n_split, H), jnp.float32),
        grid_spec=pltpu.PrefetchScalarGridSpec(
            num_scalar_prefetch=0,
            grid=(B, n_split, steps_per_split),
            in_specs=[
                # bias: tiny SMEM-resident scalar
                pl.BlockSpec(memory_space=pltpu.MemorySpace.SMEM),
                # x tile: pipelined (double-buffered) over the N axis
                pl.BlockSpec((1, tile_n, H), x_index),
                # weight row: constant index_map => resident in VMEM
                pl.BlockSpec((1, H), lambda b, c, n: (0, 0)),
            ],
            out_specs=pl.BlockSpec((1, 1, H), lambda b, c, n: (b, c, 0)),
            scratch_shapes=[pltpu.VMEM((1, H), jnp.float32)],
        ),
        compiler_params=pltpu.CompilerParams(
            dimension_semantics=("parallel", "parallel", "arbitrary"),
            vmem_limit_bytes=vmem_limit,
        ),
    )(bias32, x2, w_row)

    # Combine per-split f32 partials (tiny) and cast to the input dtype.
    return partials.sum(axis=1).astype(x.dtype)


def scored_pooling_ref(x, weight, bias):
    # Pure-JAX reference mirroring the PyTorch module (elementwise f32 math).
    logits = jnp.sum(x * weight, axis=-1, keepdims=True) + bias[0]
    score = jax.nn.sigmoid(logits)
    return (x * score).mean(axis=(-3, -2))


if __name__ == "__main__":
    key = jax.random.PRNGKey(0)
    kx, kw, kb, kx2, kx3 = jax.random.split(key, 5)

    # Small shapes consistent with the forward: x (B, T, S, H)
    B, T, S, H = 2, 8, 8, 32
    x = jax.random.normal(kx, (B, T, S, H), dtype=jnp.float32)

    # Deterministic nn.Linear(H, 1)-style init: uniform(-1/sqrt(H), 1/sqrt(H))
    bound = 1.0 / (H ** 0.5)
    weight = jax.random.uniform(kw, (H,), minval=-bound, maxval=bound,
                                dtype=jnp.float32)
    bias = jax.random.uniform(kb, (1,), minval=-bound, maxval=bound,
                              dtype=jnp.float32)

    # Tolerance: the MXU evaluates f32 matmuls via bf16 passes by default, so
    # allow a few e-3 absolute vs the elementwise-f32 reference.
    ATOL = RTOL = 2e-3

    ref = scored_pooling_ref(x, weight, bias)

    # Default tile selection (single reduction step for this small N).
    out_default = jax.block_until_ready(scored_pooling(x, weight, bias))
    # Multi-step reduction path (tile_n=16 -> 4 accumulation steps over N=64).
    out_tiled = jax.block_until_ready(scored_pooling(x, weight, bias, tile_n=16))

    assert out_default.shape == (B, H), out_default.shape
    assert jnp.allclose(out_default, ref, atol=ATOL, rtol=RTOL), (
        float(jnp.max(jnp.abs(out_default - ref))))
    assert jnp.allclose(out_tiled, ref, atol=ATOL, rtol=RTOL), (
        float(jnp.max(jnp.abs(out_tiled - ref))))

    # Ragged case: N = T*S not a multiple of tile_n -> exercises the in-kernel
    # tail mask (no jnp.pad / no extra HBM traffic).
    T2, S2 = 5, 7
    xr = jax.random.normal(kx2, (B, T2, S2, H), dtype=jnp.float32)
    ref_r = scored_pooling_ref(xr, weight, bias)
    out_r = jax.block_until_ready(scored_pooling(xr, weight, bias, tile_n=16))
    assert jnp.allclose(out_r, ref_r, atol=ATOL, rtol=RTOL), (
        float(jnp.max(jnp.abs(out_r - ref_r))))

    # B == 1 with the reduction split over two "cores" (v7x dual-TC path);
    # tile_n=24 makes n_steps odd so a padded split step is also exercised.
    x1 = jax.random.normal(kx3, (1, T, S, H), dtype=jnp.float32)
    ref_1 = scored_pooling_ref(x1, weight, bias)
    out_1 = jax.block_until_ready(
        scored_pooling(x1, weight, bias, tile_n=24, n_split=2))
    assert jnp.allclose(out_1, ref_1, atol=ATOL, rtol=RTOL), (
        float(jnp.max(jnp.abs(out_1 - ref_1))))

    print("KERNEL_OK")
</pallas_src>

<mosaic_0001>
module attributes {stable_mosaic.version = 11 : i64} {
  func.func @_scored_pooling_kernel(%arg0: i32, %arg1: i32, %arg2: i32, %arg3: memref<1xf32, #tpu.memory_space<smem>>, %arg4: memref<1x64x32xf32, #tpu.memory_space<vmem>>, %arg5: memref<1x32xf32, #tpu.memory_space<vmem>>, %arg6: memref<1x1x32xf32, #tpu.memory_space<vmem>>, %arg7: memref<1x32xf32, #tpu.memory_space<vmem>>) attributes {dimension_semantics = [#tpu.dimension_semantics<parallel>, #tpu.dimension_semantics<parallel>, #tpu.dimension_semantics<arbitrary>], iteration_bounds = array<i64: 2, 1, 1>, scalar_prefetch = 0 : i64, scratch_operands = 1 : i64, tpu.core_type = #tpu.core_type<tc>, window_params = [{transform_indices = @transform_0, window_bounds = array<i64: 1>}, {transform_indices = @transform_1, window_bounds = array<i64: 1, 64, 32>}, {pipeline_mode = #tpu.pipeline_mode<synchronous>, transform_indices = @transform_2, window_bounds = array<i64: 1, 32>}, {transform_indices = @transform_3, window_bounds = array<i64: 1, 1, 32>}]} {
    %c0_i32 = arith.constant 0 : i32
    %0 = arith.cmpi eq, %arg2, %c0_i32 : i32
    %1 = arith.extui %0 : i1 to i32
    %c0_i32_0 = arith.constant 0 : i32
    %2 = arith.cmpi ne, %1, %c0_i32_0 : i32
    scf.if %2 {
      %cst_14 = arith.constant 0.000000e+00 : f32
      %22 = vector.broadcast %cst_14 : f32 to vector<1x32xf32>
      %c0_15 = arith.constant 0 : index
      %c0_16 = arith.constant 0 : index
      %23 = vector.load %arg7[%c0_15, %c0_16] : memref<1x32xf32, #tpu.memory_space<vmem>>, vector<1x32xf32>
      tpu.vector_store %arg7[%c0_15, %c0_16], %22 {strides = array<i32>} : memref<1x32xf32, #tpu.memory_space<vmem>>, vector<1x32xf32>,
    } else {
    }
    %c0 = arith.constant 0 : index
    %c0_1 = arith.constant 0 : index
    %c0_2 = arith.constant 0 : index
    %3 = vector.load %arg4[%c0, %c0_1, %c0_2] : memref<1x64x32xf32, #tpu.memory_space<vmem>>, vector<1x64x32xf32>
    %4 = vector.shape_cast %3 : vector<1x64x32xf32> to vector<64x32xf32>
    %c0_3 = arith.constant 0 : index
    %c0_4 = arith.constant 0 : index
    %5 = vector.load %arg5[%c0_3, %c0_4] : memref<1x32xf32, #tpu.memory_space<vmem>>, vector<1x32xf32>
    %cst = arith.constant dense<0.000000e+00> : vector<1x64xf32>
    %6 = tpu.matmul %5, %4, %cst {dimension_numbers = #tpu.dot_dimension_numbers<[1], [1], [0], [0], [0, 0, 1, 0], [], []>} : vector<1x32xf32>, vector<64x32xf32>, vector<1x64xf32> -> vector<1x64xf32>
    %c0_5 = arith.constant 0 : index
    %7 = memref.load %arg3[%c0_5] : memref<1xf32, #tpu.memory_space<smem>>
    %8 = vector.broadcast %7 : f32 to vector<1x64xf32>
    %9 = arith.addf %6, %8 : vector<1x64xf32>
    %10 = arith.negf %9 : vector<1x64xf32>
    %11 = math.exp %10 : vector<1x64xf32>
    %cst_6 = arith.constant 1.000000e+00 : f32
    %12 = vector.broadcast %cst_6 : f32 to vector<1x64xf32>
    %13 = arith.addf %12, %11 : vector<1x64xf32>
    %14 = arith.divf %12, %13 : vector<1x64xf32>
    %cst_7 = arith.constant dense<0.000000e+00> : vector<1x32xf32>
    %15 = tpu.matmul %14, %4, %cst_7 {dimension_numbers = #tpu.dot_dimension_numbers<[1], [0], [0], [1], [0, 0, 1, 1], [], []>} : vector<1x64xf32>, vector<64x32xf32>, vector<1x32xf32> -> vector<1x32xf32>
    %c0_8 = arith.constant 0 : index
    %c0_9 = arith.constant 0 : index
    %16 = vector.load %arg7[%c0_8, %c0_9] : memref<1x32xf32, #tpu.memory_space<vmem>>, vector<1x32xf32>
    %17 = arith.addf %16, %15 : vector<1x32xf32>
    %c0_10 = arith.constant 0 : index
    %c0_11 = arith.constant 0 : index
    %18 = vector.load %arg7[%c0_10, %c0_11] : memref<1x32xf32, #tpu.memory_space<vmem>>, vector<1x32xf32>
    tpu.vector_store %arg7[%c0_10, %c0_11], %17 {strides = array<i32>} : memref<1x32xf32, #tpu.memory_space<vmem>>, vector<1x32xf32>,
    %c0_i32_12 = arith.constant 0 : i32
    %19 = arith.cmpi eq, %arg2, %c0_i32_12 : i32
    %20 = arith.extui %19 : i1 to i32
    %c0_i32_13 = arith.constant 0 : i32
    %21 = arith.cmpi ne, %20, %c0_i32_13 : i32
    scf.if %21 {
      %c0_14 = arith.constant 0 : index
      %c0_15 = arith.constant 0 : index
      %22 = vector.load %arg7[%c0_14, %c0_15] : memref<1x32xf32, #tpu.memory_space<vmem>>, vector<1x32xf32>
      %cst_16 = arith.constant 1.562500e-02 : f32
      %23 = vector.broadcast %cst_16 : f32 to vector<1x32xf32>
      %24 = arith.mulf %22, %23 : vector<1x32xf32>
      %c0_17 = arith.constant 0 : index
      %c0_18 = arith.constant 0 : index
      %c0_19 = arith.constant 0 : index
      %25 = vector.load %arg6[%c0_17, %c0_18, %c0_19] : memref<1x1x32xf32, #tpu.memory_space<vmem>>, vector<1x1x32xf32>
      %26 = vector.shape_cast %25 : vector<1x1x32xf32> to vector<1x32xf32>
      %27 = vector.shape_cast %24 : vector<1x32xf32> to vector<1x1x32xf32>
      tpu.vector_store %arg6[%c0_17, %c0_18, %c0_19], %27 {strides = array<i32>} : memref<1x1x32xf32, #tpu.memory_space<vmem>>, vector<1x1x32xf32>,
    } else {
    }
    return
  }
  func.func @transform_0(%arg0: i32, %arg1: i32, %arg2: i32) -> i32 {
    %c0_i32 = arith.constant 0 : i32
    %c0_i32_0 = arith.constant 0 : i32
    return %c0_i32 : i32
  }
  func.func @transform_1(%arg0: i32, %arg1: i32, %arg2: i32) -> (i32, i32, i32) {
    %c1_i32 = arith.constant 1 : i32
    %0 = arith.muli %arg1, %c1_i32 : i32
    %1 = arith.addi %0, %arg2 : i32
    %c0_i32 = arith.constant 0 : i32
    %c0_i32_0 = arith.constant 0 : i32
    return %arg0, %1, %c0_i32 : i32, i32, i32
  }
  func.func @transform_2(%arg0: i32, %arg1: i32, %arg2: i32) -> (i32, i32) {
    %c0_i32 = arith.constant 0 : i32
    %c0_i32_0 = arith.constant 0 : i32
    %c0_i32_1 = arith.constant 0 : i32
    return %c0_i32, %c0_i32_0 : i32, i32
  }
  func.func @transform_3(%arg0: i32, %arg1: i32, %arg2: i32) -> (i32, i32, i32) {
    %c0_i32 = arith.constant 0 : i32
    %c0_i32_0 = arith.constant 0 : i32
    return %arg0, %arg1, %c0_i32 : i32, i32, i32
  }
}

</mosaic_0001>

<bundles_post_ra>
// kernel: tpu_custom_call.1
= control target key start
LH: loop header
LB: loop body
LE: loop exit
PB: predicated region body
PF: predicated region fallthrough
CT: control target
= control target key end

     0   :  { %s715_s0 = inlined_call_operand.<no memory space> [shape: f32[1], index: 0, kind: input, shape index: {}]   ;;  %s716_s1 = inlined_call_operand.vmem [shape: f32[2,64,32], index: 1, kind: input, shape index: {}]   ;;  %s717_s2 = inlined_call_operand.vmem [shape: f32[1,32], index: 2, kind: input, shape index: {}]   ;;  %s718_s3 = inlined_call_operand.hbm [shape: f32[2,1,32], index: 3, kind: output, shape index: {}]  }
   0x1   :  { %8 = sst [smem:[#allocation3]] %s715_s0 }
   0x2   :  { %9 = vsyncpa [#allocation5], 0 }
   0x3   :  { %11 = vsyncpa [#allocation5 + $0x1], 0  ;;  %s603_s14 = smov 0   ;;  %s605_s15 = smov 0  }
   0x4   :  { %s607_s16 = smov 0   ;;  %s609_s17 = smov 0  }
   0x5   :  { %s611_s18 = smov 0   ;;  %s613_s19 = smov 0  }
   0x6 LB: > { %s418_s0 = sadd.s32 4294967295, %s577_s19   ;;  %s419_s20 = sadd.s32 4294967294, %s577_s19   ;;  %s577_s19 = sphi %s613_s19, %s17_s19   ;;  %s573_s18 = sphi %s611_s18, %s725_s18   ;;  %s569_s17 = sphi %s609_s17, %s724_s17   ;;  %s565_s16 = sphi %s607_s16, %s723_s16   ;;  %s561_s15 = sphi %s605_s15, %s722_s15   ;;  %s557_s14 = sphi %s603_s14, %s721_s14  }
   0x7   : > { %s36_s21 = sadd.s32 1, %s573_s18  ;;  %s117_s22 = sadd.s32 1, %s565_s16 }
   0x8   : > { %p38_p0 = scmp.ge.s32.totalorder %s36_s21, 2  ;;  %p127_p1 = scmp.ne.s32.totalorder %s565_s16, %s561_s15 }
   0x9   : > { %p128_p2 = scmp.eq.s32.totalorder %s418_s0, 1  ;;  %p133_p3 = scmp.ne.s32.totalorder %s561_s15, %s557_s14 }
   0xa   : > { %s727_s21 = smov (%p38_p0, %s36_s21), 0  ;;  %p134_p5 = scmp.eq.s32.totalorder %s419_s20, 1 }
   0xb   : > { %p643_p4 = por %p128_p2, %p127_p1  ;;  %s112_s24 = ssub.s32 %s573_s18, %s727_s21 }
   0xc   : > { %p422_p6 = scmp.ge.s32.totalorder %s577_s19, 1  ;;  %p115_p7 = scmp.eq.s32.totalorder %s112_s24, 0 }
   0xd   : > { %p650_p8 = por %p134_p5, %p133_p3  ;;  %p173_p9 = scmp.lt.s32.totalorder %s577_s19, 3 }
   0xe   : > { %s656_s26 = scalar_select %p115_p7, %s565_s16, %s117_s22  }
   0xf   : > { %p174_p10 = pnand %p422_p6, %p173_p9 }
  0x10   : > { %p203_p11 = scmp.lt.s32.totalorder (!%p174_p10), %s569_s17, 1  ;;  %s228_s7 = sld [smem:[#allocation3]] (!%p174_p10) }
  0x11   : > { %177 = sbr.rel (%p174_p10) target bundleno = 355 (0x163), region = 32  ;;  %s199_s8 = sand.u32 (!%p174_p10), 1, %s561_s15  }
  0x12   : > { %s341_s11 = scalar_lea.hbm (!%p174_p10), %s718_s3, %s569_s17  ;;  %s200_s12 = scalar_lea.vmem (!%p174_p10), [#allocation4], %s199_s8 }
  0x13   : > { %s343_s13 = sshll.u32 (!%p174_p10), %s200_s12, 4  ;;  %s345_s0 = sshll.u32 (!%p174_p10), %s341_s11, 4  ;;  %s344_s13 = int_to_ptr.vmem [resolvable:$true] %s343_s13  ;;  %s346_s0 = int_to_ptr.hbm [resolvable:$true] %s345_s0 }
  0x14   : > { %s332_s20 = scalar_lea.sflag (!%p174_p10), [#allocation5], %s199_s8  ;;  %s513_s22 = sshra.s32 (!%p174_p10), %s346_s0, 4  ;;  %s514_s22 = int_to_ptr.hbm [resolvable:$true] %s513_s22 }
  0x15   : > { %s515_s24 = scalar_lea.hbm (!%p174_p10), %s514_s22, 1  ;;  %p520_p1 = scmp.lt.s32.totalorder (!%p174_p10), %s514_s22, %s718_s3 }
  0x16   : > { %s204_s27 = scalar_select %p203_p11, %s569_s17, 1  ;;  %vm230_vm0 = vcmask 261120   ;;  %v227_v8 = vld [vmem:[%s717_s2] sm:$0x1]  ;;  %v229_v9 = vstv %s228_s7  ;;  %vm217_vm1 = vcmask 253952   ;;  %v579_v11 = vmov 0.0  }
  0x17   : > { %218 = vst.msk [vmem:[#allocation2] sm:$0x1] %vm217_vm1, %v579_v11  ;;  %vm297_vm5 = vcmask 523264   ;;  %p516_p12 = scmp.ne.s32.totalorder %s514_s22, %s515_s24  ;;  %s519_s17 = scalar_lea.hbm %s718_s3, 2 }
  0x18   : > { %s438_s28 = sshll.u32 %s204_s27, 6  ;;  %p521_p2 = scmp.lt.s32.totalorder %s519_s17, %s515_s24 }
  0x19   : > { %s210_s4 = scalar_lea.vmem %s716_s1, %s438_s28  ;;  %p517_p13 = pnand %p516_p12, %p643_p4 }
  0x1a   : > { %v226_v0 = vld [vmem:[%s210_s4 + $0x38] sm:$0xff]  ;;  %v225_v1 = vld [vmem:[%s210_s4 + $0x30] sm:$0xff]  ;;  %v224_v2 = vld [vmem:[%s210_s4 + $0x28] sm:$0xff]  ;;  %p522_p3 = por %p521_p2, %p520_p1 }
  0x1b   : > { %425 = vmatpush.xpose.msk.msra.mxu0 %vm230_vm0, %v226_v0  ;;  %309 = vmatpush.msra.mxu1 %v226_v0  ;;  %v223_v3 = vld [vmem:[%s210_s4 + $0x20] sm:$0xff]  ;;  %v222_v4 = vld [vmem:[%s210_s4 + $0x18] sm:$0xff]  ;;  %v221_v5 = vld [vmem:[%s210_s4 + $0x10] sm:$0xff]  ;;  %p518_p0 = pneg %p517_p13 }
  0x1c   : > { %v220_v6 = vld [vmem:[%s210_s4 + $0x8] sm:$0xff]  ;;  %v219_v7 = vld [vmem:[%s210_s4] sm:$0xff] }
  0x1d   : > { %310 = vmatpush.msra.mxu1 %v225_v1  ;;  %p523_p5 = pnand %p522_p3, %p518_p0 }
  0x1e   : > { %v321_v26 = vld [vmem:[#allocation2] sm:$0x1] }
  0x1f   : > { %426 = vmatpush.xpose.msk.msra.mxu0 %vm230_vm0, %v225_v1  ;;  %311 = vmatpush.msra.mxu1 %v224_v2 }
  0x21   : > { %312 = vmatpush.msra.mxu1 %v223_v3 }
  0x23   : > { %427 = vmatpush.xpose.msk.msra.mxu0 %vm230_vm0, %v224_v2  ;;  %313 = vmatpush.msra.mxu1 %v222_v4 }
  0x25   : > { %314 = vmatpush.msra.mxu1 %v221_v5 }
  0x27   : > { %428 = vmatpush.xpose.msk.msra.mxu0 %vm230_vm0, %v223_v3  ;;  %315 = vmatpush.msra.mxu1 %v220_v6 }
  0x29   : > { %316 = vmatpush.msra.mxu1 %v219_v7 }
  0x2b   : > { %429 = vmatpush.xpose.msk.msra.mxu0 %vm230_vm0, %v222_v4 }
  0x2f   : > { %430 = vmatpush.xpose.msk.msra.mxu0 %vm230_vm0, %v221_v5 }
  0x33   : > { %431 = vmatpush.xpose.msk.msra.mxu0 %vm230_vm0, %v220_v6 }
  0x37   : > { %432 = vmatpush.xpose.msk.msra.mxu0 %vm230_vm0, %v219_v7 }
  0x3a   : > { %433 = vmatmul.msk.f32.vlgmr.msra.gmra.mxu0 %vm230_vm0, %v227_v8 }
  0xb7   : > { %v275_v10 = vpop.f32.mrf.mxu0 }
  0xb8   : > { %v276_v12 = vadd.f32 %v275_v10, %v229_v9 }
  0xba   : > { %v434_v13 = vmul.f32 -1.442695, %v276_v12 }
  0xbc   : > { %495 = vpow2.f32 %v434_v13 }
  0xc2   : > { %v496_v14 = vpop.eup %495 }
  0xc3   : > { %v281_v15 = vadd.f32 1.0, %v496_v14 }
  0xc5   : > { %497 = vrcp.f32 %v281_v15  ;;  %v293_v19 = vand.u32 2147483648, %v281_v15  ;;  %v291_v21 = vand.u32 2147483647, %v281_v15  ;;  %vm287_vm3 = vweird.f32 %v281_v15 }
  0xc7   : > { %v294_v23 = vor.u32 1.1754944e-38, %v293_v19  ;;  %vm292_vm6 = vcmp.eq.f32.partialorder %v291_v21, 8.507059e+37 }
  0xcb   : > { %v498_v16 = vpop.eup %497 }
  0xcc   : > { %v283_v17 = vmul.f32 %v498_v16, %v281_v15  ;;  %vm288_vm2 = vweird.f32 %v498_v16 }
  0xcd   : > { %vm289_vm4 = vmor %vm287_vm3, %vm288_vm2 }
  0xce   : > { %v284_v18 = vsub.f32 1.0, %v283_v17 }
  0xd0   : > { %v285_v20 = vmul.f32 %v498_v16, %v284_v18 }
  0xd2   : > { %v286_v22 = vadd.f32 %v498_v16, %v285_v20 }
  0xd4   : > { %v290_v24 = vsel %vm289_vm4, %v498_v16, %v286_v22 }
  0xd5   : > { %v295_v25 = vsel %vm292_vm6, %v294_v23, %v290_v24 }
  0xd6   : > { %435 = vmatmul.msk.f32.vlgmr.msra.gmra.mxu1 %vm297_vm5, %v295_v25 }
 0x153   : > { %v318_v27 = vpop.f32.mrf.mxu1 }
 0x154   : > { %v322_v28 = vadd.f32 %v321_v26, %v318_v27 }
 0x156   : > { %324 = vst.msk [vmem:[#allocation2] sm:$0x1] %vm217_vm1, %v322_v28 }
 0x15d   : > { %v328_v29 = vld [vmem:[#allocation2] sm:$0x1] }
 0x15e   : > { %v329_v30 = vmul.f32 0.015625, %v328_v29 }
 0x160   : > { %330 = vst.msk [vmem:[%s200_s12] sm:$0x1] %vm217_vm1, %v329_v30 }
 0x161   : > { %526 = shalt.err (!%p523_p5)
}
 0x162   : > { %439 = dma.vmem_to_hbm [thread:$0]  (%p643_p4), %s344_s13, 16, %s346_s0, %s332_s20  }
 0x163 PF: > { %p445_p6 = scmp.ge.s32.totalorder %s577_s19, 2  ;;  %s357_s4 = sand.u32 1, %s557_s14  }
 0x164   : > { %s358_s5 = scalar_lea.sflag [#allocation5], %s357_s4 }
 0x165   : > { %p442_p7 = pnand %p445_p6, %p650_p8 }
 0x167   : > { %p443_p9 = pneg %p442_p7 }
 0x169   : > { %552 = dma.done.wait (%p443_p9), %s358_s5, 16  }
 0x16a   : > { %554 = vsyncadd (%p443_p9), %s358_s5, 4294967280  ;;  %s17_s19 = sadd.s32 1, %s577_s19   ;;  %s721_s14 = smov %s561_s15 }
 0x16b   : > { %p14_p10 = scmp.ge.s32.totalorder %s17_s19, 4   ;;  %s722_s15 = smov %s565_s16 }
 0x16c   : > { %s723_s16 = smov %s656_s26  ;;  %s724_s17 = smov %s573_s18 }
 0x16d   : > { %s725_s18 = smov %s727_s21  ;;  %16 = sbr.rel (!%p14_p10) target bundleno = 6 (0x6), region = 75 }
 0x172   :  { %363 = vsyncpa [#allocation5], 1 }
 0x173   :  { %365 = vsyncpa [#allocation5 + $0x1], 1 }

</bundles_post_ra>
